<compile_context>
chip_gen: v5e
topology: v5e:2x2
jax: 0.10.0
libtpu: 0.0.40
codegen_flags: <defaults>
</compile_context>

<pallas_src>
import functools
import math

import jax
import jax.numpy as jnp
from jax.experimental import pallas as pl
from jax.experimental.pallas import tpu as pltpu

LN_EPS = 1e-7  # deberta-base layer_norm_eps
# 32 MiB is safe on every generation (v5e scoped default is only 16 MiB); tune per chip:
# raise toward 64-96 MiB on v6e (128 MiB physical), keep <=48 MiB on v7x (64 MiB physical).
_VMEM_LIMIT_BYTES = 32 * 1024 * 1024


# ----------------------------- in-kernel helpers ------------------------------

def _identity(y):
    return y


def _gelu(y):
    # exact (erf-based) GELU, matching HF ACT2FN["gelu"]
    return 0.5 * y * (1.0 + jax.lax.erf(y * 0.7071067811865476))


def _ln(y, g, b):
    mu = jnp.mean(y, axis=-1, keepdims=True)
    var = jnp.mean(jnp.square(y - mu), axis=-1, keepdims=True)
    return (y - mu) * jax.lax.rsqrt(var + LN_EPS) * g + b


def _reduction_tile(n, cap):
    """Largest tile <= cap that evenly divides n (keeps the MXU K-reduction exact)."""
    if n <= cap:
        return n
    for t in range(min(cap, n), 0, -1):
        if n % t == 0 and t % 128 == 0:
            return t
    return n


# ----------------------- tiled linear: act(x @ w + b) --------------------------

def _linear_kernel(x_ref, w_ref, b_ref, o_ref, acc_ref, *, act):
    @pl.when(pl.program_id(2) == 0)
    def _():
        acc_ref[...] = jnp.zeros_like(acc_ref)

    acc_ref[...] += jnp.dot(x_ref[...], w_ref[...],
                            preferred_element_type=jnp.float32)

    @pl.when(pl.program_id(2) == pl.num_programs(2) - 1)
    def _():
        o_ref[...] = act(acc_ref[...] + b_ref[...]).astype(o_ref.dtype)


def pallas_linear(x, w, b, act=_identity, out_dtype=jnp.float32,
                  tm=256, tn=256, tk=512):
    """x [M,K] @ w [K,N] + b [N]; bf16 MXU operands, f32 accumulate, out_dtype output."""
    M, K = x.shape
    N = w.shape[1]
    tm, tn = min(tm, M), min(tn, N)
    tk = _reduction_tile(K, tk)
    return pl.pallas_call(
        functools.partial(_linear_kernel, act=act),
        out_shape=jax.ShapeDtypeStruct((M, N), out_dtype),
        grid=(pl.cdiv(M, tm), pl.cdiv(N, tn), pl.cdiv(K, tk)),
        in_specs=[pl.BlockSpec((tm, tk), lambda i, j, k: (i, k)),
                  pl.BlockSpec((tk, tn), lambda i, j, k: (k, j)),
                  pl.BlockSpec((1, tn), lambda i, j, k: (0, j))],
        out_specs=pl.BlockSpec((tm, tn), lambda i, j, k: (i, j)),
        scratch_shapes=[pltpu.VMEM((tm, tn), jnp.float32)],
        compiler_params=pltpu.CompilerParams(
            dimension_semantics=("parallel", "parallel", "arbitrary"),
            vmem_limit_bytes=_VMEM_LIMIT_BYTES),
    )(x.astype(jnp.bfloat16), w.astype(jnp.bfloat16),
      b.reshape(1, N).astype(jnp.float32))


# -------------------- embedding LayerNorm (+ mask), row tiled ------------------

def _emb_ln_kernel(x_ref, m_ref, g_ref, b_ref, o_ref):
    y = _ln(x_ref[...], g_ref[...], b_ref[...]) * m_ref[...]
    o_ref[...] = y.astype(o_ref.dtype)


def pallas_emb_layernorm(x2d, mask_col, gamma, beta, tr=256):
    M, H = x2d.shape
    tr = min(tr, M)
    return pl.pallas_call(
        _emb_ln_kernel,
        out_shape=jax.ShapeDtypeStruct((M, H), jnp.float32),
        grid=(pl.cdiv(M, tr),),
        in_specs=[pl.BlockSpec((tr, H), lambda i: (i, 0)),
                  pl.BlockSpec((tr, 1), lambda i: (i, 0)),
                  pl.BlockSpec((1, H), lambda i: (0, 0)),
                  pl.BlockSpec((1, H), lambda i: (0, 0))],
        out_specs=pl.BlockSpec((tr, H), lambda i: (i, 0)),
        compiler_params=pltpu.CompilerParams(
            dimension_semantics=("parallel",),
            vmem_limit_bytes=_VMEM_LIMIT_BYTES),
    )(x2d.astype(jnp.float32), mask_col.astype(jnp.float32),
      gamma.reshape(1, H).astype(jnp.float32),
      beta.reshape(1, H).astype(jnp.float32))


# ------------- c2p / p2c score slabs: grid (batch, head), bf16 outputs -----------------

def _rel_scores_kernel(q_ref, k_ref, pk_ref, pq_ref, c2p_ref, p2c_ref):
    dn = (((1,), (1,)), ((), ()))
    c2p_ref[0, 0] = jax.lax.dot_general(
        q_ref[0, 0], pk_ref[0], dn,
        preferred_element_type=jnp.float32).astype(c2p_ref.dtype)
    p2c_ref[0, 0] = jax.lax.dot_general(
        k_ref[0, 0], pq_ref[0], dn,
        preferred_element_type=jnp.float32).astype(p2c_ref.dtype)


def pallas_rel_scores(q, k, pos_k, pos_q):
    B, nH, S, Dh = q.shape
    P = pos_k.shape[1]
    spec_qk = pl.BlockSpec((1, 1, S, Dh), lambda b, h: (b, h, 0, 0))
    spec_pos = pl.BlockSpec((1, P, Dh), lambda b, h: (h, 0, 0))
    spec_out = pl.BlockSpec((1, 1, S, P), lambda b, h: (b, h, 0, 0))
    return pl.pallas_call(
        _rel_scores_kernel,
        out_shape=(jax.ShapeDtypeStruct((B, nH, S, P), jnp.bfloat16),
                   jax.ShapeDtypeStruct((B, nH, S, P), jnp.bfloat16)),
        grid=(B, nH),
        in_specs=[spec_qk, spec_qk, spec_pos, spec_pos],
        out_specs=(spec_out, spec_out),
        compiler_params=pltpu.CompilerParams(
            dimension_semantics=("parallel", "parallel"),
            vmem_limit_bytes=_VMEM_LIMIT_BYTES),
    )(q, k, pos_k, pos_q)


# --------- fused attention: c2c scores + rel bias + scale + XSoftmax + context ----------
# grid (batch, head); the 2-D mask is built in-kernel from the 1-D [B,S] mask.

def _attention_kernel(q_ref, k_ref, v_ref, bias_ref, mrow_ref, mcol_ref, o_ref, *, scale):
    q = q_ref[0, 0]                                    # [S, Dh] bf16
    k = k_ref[0, 0]
    v = v_ref[0, 0]
    s = jax.lax.dot_general(q, k, (((1,), (1,)), ((), ())),
                            preferred_element_type=jnp.float32)      # [S, S] f32
    s = (s + bias_ref[0, 0].astype(jnp.float32)) * scale             # scale on f32 scores
    mask2d = mcol_ref[0] * mrow_ref[...]               # [S,1]*[1,S] -> [S,S], built in-kernel
    s = jnp.where(mask2d > 0.0, s, jnp.finfo(jnp.float32).min)
    mx = jnp.max(s, axis=-1, keepdims=True)
    p = jnp.exp(s - mx)
    inv = pl.reciprocal(jnp.sum(p, axis=-1, keepdims=True), approx=False)
    probs = (p * inv) * mask2d                         # XSoftmax: zero masked probs
    o_ref[0, 0] = jax.lax.dot_general(
        probs.astype(jnp.bfloat16), v, (((1,), (0,)), ((), ())),
        preferred_element_type=jnp.float32).astype(o_ref.dtype)


def pallas_attention(q, k, v, rel_bias, mask1d, scale):
    B, nH, S, Dh = q.shape
    mask_row = mask1d.astype(jnp.float32)              # [B, S]
    mask_col = mask_row[:, :, None]                    # [B, S, 1] (free reshape)
    spec_h = pl.BlockSpec((1, 1, S, Dh), lambda b, h: (b, h, 0, 0))
    spec_bias = pl.BlockSpec((1, 1, S, S), lambda b, h: (b, h, 0, 0))
    spec_mrow = pl.BlockSpec((1, S), lambda b, h: (b, 0))
    spec_mcol = pl.BlockSpec((1, S, 1), lambda b, h: (b, 0, 0))
    return pl.pallas_call(
        functools.partial(_attention_kernel, scale=scale),
        out_shape=jax.ShapeDtypeStruct((B, nH, S, Dh), jnp.bfloat16),
        grid=(B, nH),
        in_specs=[spec_h, spec_h, spec_h, spec_bias, spec_mrow, spec_mcol],
        out_specs=spec_h,
        compiler_params=pltpu.CompilerParams(
            dimension_semantics=("parallel", "parallel"),
            vmem_limit_bytes=_VMEM_LIMIT_BYTES),
    )(q, k, v, rel_bias, mask_row, mask_col)


# --- fused attention-output: head-concat matmul + bias + residual -> LayerNorm ----------
# Consumes ctx directly as [B,nH,S,Dh]; the head concat happens inside the matmul, so the
# [B,nH,S,Dh] -> [B*S,H] HBM transpose is eliminated.

def _attnout_res_ln_kernel(ctx_ref, w_ref, b_ref, r_ref, g_ref, be_ref, o_ref, *, n_heads):
    acc = jnp.dot(ctx_ref[0, 0], w_ref[0], preferred_element_type=jnp.float32)
    for h in range(1, n_heads):                        # static unroll over heads
        acc += jnp.dot(ctx_ref[0, h], w_ref[h], preferred_element_type=jnp.float32)
    y = acc + b_ref[...] + r_ref[0]
    o_ref[0] = _ln(y, g_ref[...], be_ref[...]).astype(o_ref.dtype)


def pallas_attnout_res_ln(ctx, w, b, resid3, gamma, beta, tm=256):
    B, nH, S, Dh = ctx.shape
    H = w.shape[1]
    tm = min(tm, S)
    w3 = w.reshape(nH, Dh, H)
    return pl.pallas_call(
        functools.partial(_attnout_res_ln_kernel, n_heads=nH),
        out_shape=jax.ShapeDtypeStruct((B, S, H), jnp.float32),
        grid=(B, pl.cdiv(S, tm)),
        in_specs=[pl.BlockSpec((1, nH, tm, Dh), lambda b, i: (b, 0, i, 0)),
                  pl.BlockSpec((nH, Dh, H), lambda b, i: (0, 0, 0)),
                  pl.BlockSpec((1, H), lambda b, i: (0, 0)),
                  pl.BlockSpec((1, tm, H), lambda b, i: (b, i, 0)),
                  pl.BlockSpec((1, H), lambda b, i: (0, 0)),
                  pl.BlockSpec((1, H), lambda b, i: (0, 0))],
        out_specs=pl.BlockSpec((1, tm, H), lambda b, i: (b, i, 0)),
        compiler_params=pltpu.CompilerParams(
            dimension_semantics=("parallel", "parallel"),
            vmem_limit_bytes=_VMEM_LIMIT_BYTES),
    )(ctx, w3.astype(jnp.bfloat16), b.reshape(1, H).astype(jnp.float32),
      resid3.astype(jnp.float32), gamma.reshape(1, H).astype(jnp.float32),
      beta.reshape(1, H).astype(jnp.float32))


# ------ fused FFN: GELU(x@W1+b1)@W2+b2 + residual -> LayerNorm (I stays in VMEM) ---------

def _ffn_kernel(x_ref, w1_ref, b1_ref, w2_ref, b2_ref, g_ref, be_ref, o_ref,
                acc_ref, xb_ref):
    j = pl.program_id(1)

    @pl.when(j == 0)
    def _():
        acc_ref[...] = jnp.zeros_like(acc_ref)
        xb_ref[...] = x_ref[...].astype(jnp.bfloat16)   # cast hoisted out of the I-loop

    h = jnp.dot(xb_ref[...], w1_ref[...],
                preferred_element_type=jnp.float32) + b1_ref[...]
    h = _gelu(h)
    acc_ref[...] += jnp.dot(h.astype(jnp.bfloat16), w2_ref[...],
                            preferred_element_type=jnp.float32)

    @pl.when(j == pl.num_programs(1) - 1)
    def _():
        y = acc_ref[...] + b2_ref[...] + x_ref[...]     # residual add (f32)
        o_ref[...] = _ln(y, g_ref[...], be_ref[...]).astype(o_ref.dtype)


def pallas_ffn(x, w1, b1, w2, b2, gamma, beta, tm=256, ti=512):
    M, H = x.shape
    I = w1.shape[1]
    tm = min(tm, M)
    ti = _reduction_tile(I, ti)
    return pl.pallas_call(
        _ffn_kernel,
        out_shape=jax.ShapeDtypeStruct((M, H), jnp.float32),
        grid=(pl.cdiv(M, tm), pl.cdiv(I, ti)),
        in_specs=[pl.BlockSpec((tm, H), lambda i, j: (i, 0)),
                  pl.BlockSpec((H, ti), lambda i, j: (0, j)),
                  pl.BlockSpec((1, ti), lambda i, j: (0, j)),
                  pl.BlockSpec((ti, H), lambda i, j: (j, 0)),
                  pl.BlockSpec((1, H), lambda i, j: (0, 0)),
                  pl.BlockSpec((1, H), lambda i, j: (0, 0)),
                  pl.BlockSpec((1, H), lambda i, j: (0, 0))],
        out_specs=pl.BlockSpec((tm, H), lambda i, j: (i, 0)),
        scratch_shapes=[pltpu.VMEM((tm, H), jnp.float32),
                        pltpu.VMEM((tm, H), jnp.bfloat16)],
        compiler_params=pltpu.CompilerParams(
            dimension_semantics=("parallel", "arbitrary"),
            vmem_limit_bytes=_VMEM_LIMIT_BYTES),
    )(x.astype(jnp.float32), w1.astype(jnp.bfloat16),
      b1.reshape(1, I).astype(jnp.float32), w2.astype(jnp.bfloat16),
      b2.reshape(1, H).astype(jnp.float32),
      gamma.reshape(1, H).astype(jnp.float32),
      beta.reshape(1, H).astype(jnp.float32))


# -------------------- fused ContextPooler (token 0) + classifier ------------------------

def _pool_cls_kernel(x_ref, wp_ref, bp_ref, wc_ref, bc_ref, o_ref):
    pooled = _gelu(jnp.dot(x_ref[...], wp_ref[...],
                           preferred_element_type=jnp.float32) + bp_ref[...])
    o_ref[...] = (jnp.dot(pooled.astype(jnp.bfloat16), wc_ref[...],
                          preferred_element_type=jnp.float32) + bc_ref[...]
                  ).astype(o_ref.dtype)


def pallas_pool_cls(cls_tok, wp, bp, wc, bc):
    B, H = cls_tok.shape
    n_labels = wc.shape[1]
    return pl.pallas_call(
        _pool_cls_kernel,
        out_shape=jax.ShapeDtypeStruct((B, n_labels), jnp.float32),
        grid=(1,),
        in_specs=[pl.BlockSpec((B, H), lambda i: (0, 0)),
                  pl.BlockSpec((H, H), lambda i: (0, 0)),
                  pl.BlockSpec((1, H), lambda i: (0, 0)),
                  pl.BlockSpec((H, n_labels), lambda i: (0, 0)),
                  pl.BlockSpec((1, n_labels), lambda i: (0, 0))],
        out_specs=pl.BlockSpec((B, n_labels), lambda i: (0, 0)),
        compiler_params=pltpu.CompilerParams(dimension_semantics=("arbitrary",)),
    )(cls_tok.astype(jnp.bfloat16), wp.astype(jnp.bfloat16),
      bp.reshape(1, H).astype(jnp.float32), wc.astype(jnp.bfloat16),
      bc.reshape(1, n_labels).astype(jnp.float32))


# ------------------------------- parameter setup -----------------------------------------

def init_params(key, vocab, H, nH, I, L, span, n_labels):
    def nrm(k, shape):
        return 0.02 * jax.random.normal(k, shape, jnp.float32)

    keys = iter(jax.random.split(key, 16 * L + 16))
    zeros_h = jnp.zeros((H,), jnp.float32)
    p = {
        "word_emb": nrm(next(keys), (vocab, H)),
        "emb_ln_g": jnp.ones((H,), jnp.float32),
        "emb_ln_b": jnp.zeros((H,), jnp.float32),
        "rel_emb": nrm(next(keys), (2 * span, H)),       # shared relative-position embeddings
        "layers": [],
    }
    for _ in range(L):
        q_bias = nrm(next(keys), (H,))
        v_bias = nrm(next(keys), (H,))
        b_pos_q = nrm(next(keys), (H,))
        p["layers"].append(dict(
            w_qkv=nrm(next(keys), (H, 3 * H)),                       # in_proj (bias-free)
            qkv_bias=jnp.concatenate([q_bias, zeros_h, v_bias]),     # q/v bias fused into epilogue
            w_pos_kq=jnp.concatenate([nrm(next(keys), (H, H)),       # pos_proj (no bias)
                                      nrm(next(keys), (H, H))], axis=1),  # pos_q_proj (bias)
            b_pos_kq=jnp.concatenate([zeros_h, b_pos_q]),
            w_attn_out=nrm(next(keys), (H, H)),
            b_attn_out=nrm(next(keys), (H,)),
            attn_ln_g=jnp.ones((H,), jnp.float32),
            attn_ln_b=jnp.zeros((H,), jnp.float32),
            w_inter=nrm(next(keys), (H, I)),
            b_inter=nrm(next(keys), (I,)),
            w_out=nrm(next(keys), (I, H)),
            b_out=nrm(next(keys), (H,)),
            out_ln_g=jnp.ones((H,), jnp.float32),
            out_ln_b=jnp.zeros((H,), jnp.float32),
        ))
    p["w_pool"] = nrm(next(keys), (H, H))
    p["b_pool"] = nrm(next(keys), (H,))
    p["w_cls"] = nrm(next(keys), (H, n_labels))
    p["b_cls"] = nrm(next(keys), (n_labels,))
    return p


# -------------------------------- forward pass -------------------------------------------

def deberta_forward(p, input_ids, attention_mask, target=None, *, nH, span):
    """Mirrors Make_model.forward: returns (loss, logits) if target given else logits."""
    B, S = input_ids.shape
    H = p["word_emb"].shape[1]
    Dh = H // nH
    mask_f = attention_mask.astype(jnp.float32)
    scale = 1.0 / math.sqrt(Dh * 3)                    # scale_factor = 3 (c2c, c2p, p2c)

    # embeddings (gather is glue); LayerNorm + mask multiply fused in one kernel
    x2 = jnp.take(p["word_emb"], input_ids, axis=0).reshape(B * S, H)
    x2 = pallas_emb_layernorm(x2, mask_f.reshape(B * S, 1), p["emb_ln_g"], p["emb_ln_b"])

    # relative positions (i - j), clamped gather indices (shared across layers/batch/heads)
    pos = jnp.arange(S)
    rel = pos[:, None] - pos[None, :]
    c2p_idx = jnp.clip(rel + span, 0, 2 * span - 1)    # [S,S]
    p2c_idx = jnp.clip(-rel + span, 0, 2 * span - 1)   # [S,S]

    for lp in p["layers"]:
        # QKV projection (bf16 output: only consumers are bf16 MXU operands),
        # q/v-bias folded into the projection bias epilogue
        qkv = pallas_linear(x2, lp["w_qkv"], lp["qkv_bias"],
                            out_dtype=jnp.bfloat16)                   # [B*S, 3H] bf16
        qkv = qkv.reshape(B, S, 3, nH, Dh).transpose(2, 0, 3, 1, 4)   # [3,B,nH,S,Dh] bf16
        q, k, v = qkv[0], qkv[1], qkv[2]

        # pos_proj + pos_q_proj fused into one bf16 projection of the shared rel embeddings
        pos_kq = pallas_linear(p["rel_emb"], lp["w_pos_kq"], lp["b_pos_kq"],
                               out_dtype=jnp.bfloat16)                # [2*span, 2H] bf16
        pos_kq = pos_kq.reshape(2 * span, 2, nH, Dh).transpose(1, 2, 0, 3)  # [2,nH,2*span,Dh]
        pos_k, pos_q = pos_kq[0], pos_kq[1]

        # disentangled c2p / p2c score slabs, tiled per (batch, head), bf16 outputs
        c2p_att, p2c_att = pallas_rel_scores(q, k, pos_k, pos_q)      # [B,nH,S,2*span] bf16

        # TODO(synk): remaining fusion opportunity - move this diagonal gather into the
        # attention kernel (strided pltpu.roll / in-kernel gather) to avoid the bf16
        # [B,nH,S,S] rel_bias HBM round trip entirely. Kept in glue for lowering safety.
        c2p = jnp.take_along_axis(c2p_att, c2p_idx[None, None], axis=-1)
        p2c = jnp.swapaxes(jnp.take_along_axis(p2c_att, p2c_idx[None, None], axis=-1), -1, -2)
        rel_bias = c2p + p2c                                          # [B,nH,S,S] bf16

        # fused attention per (batch, head): c2c + rel bias, scale, in-kernel 2-D mask,
        # XSoftmax, probs @ V; bf16 output
        ctx = pallas_attention(q, k, v, rel_bias, mask_f, scale)      # [B,nH,S,Dh] bf16

        # attention-output projection (head concat inside the matmul) + residual + LayerNorm
        x_attn = pallas_attnout_res_ln(ctx, lp["w_attn_out"], lp["b_attn_out"],
                                       x2.reshape(B, S, H),
                                       lp["attn_ln_g"], lp["attn_ln_b"])  # [B,S,H] f32

        # fused FFN (intermediate never leaves VMEM) + residual + LayerNorm
        x2 = pallas_ffn(x_attn.reshape(B * S, H), lp["w_inter"], lp["b_inter"],
                        lp["w_out"], lp["b_out"], lp["out_ln_g"], lp["out_ln_b"])

    # ContextPooler (token 0, dense + gelu) + classifier, one fused kernel
    cls_tok = x2.reshape(B, S, H)[:, 0, :]
    logits = pallas_pool_cls(cls_tok, p["w_pool"], p["b_pool"], p["w_cls"], p["b_cls"])

    if target is None:
        return logits

    # HF DebertaForSequenceClassification loss path (1-D labels, CE over labels >= 0)
    # TODO(synk): loss is a tiny O(B*n_labels) reduction; kept in plain-JAX glue, not a kernel.
    valid = (target >= 0).astype(jnp.float32)
    lbl = jnp.clip(target.astype(jnp.int32), 0, logits.shape[-1] - 1)
    logp = jax.nn.log_softmax(logits, axis=-1)
    nll = -jnp.take_along_axis(logp, lbl[:, None], axis=-1)[:, 0]
    loss = jnp.sum(nll * valid) / jnp.maximum(jnp.sum(valid), 1.0)
    return loss, logits


# ------------------------------------- main -----------------------------------------------

if __name__ == "__main__":
    B, S = 2, 8                    # batch, sequence length
    H, nH, I, L = 64, 4, 128, 2    # hidden, heads, intermediate, layers (small DeBERTa)
    vocab, n_labels, span = 128, 3, 8

    key = jax.random.PRNGKey(0)
    pkey, dkey = jax.random.split(key)
    params = init_params(pkey, vocab, H, nH, I, L, span, n_labels)

    input_ids = jax.random.randint(dkey, (B, S), 0, vocab, dtype=jnp.int32)
    attention_masks = jnp.array([[1, 1, 1, 1, 1, 1, 1, 1],
                                 [1, 1, 1, 1, 1, 0, 0, 0]], dtype=jnp.int32)
    target = jnp.array([1.0, 2.0], dtype=jnp.float32)

    # forward with labels -> (loss, logits); without labels -> logits (matches Make_model.forward)
    loss, logits = deberta_forward(params, input_ids, attention_masks, target, nH=nH, span=span)
    logits_only = deberta_forward(params, input_ids, attention_masks, None, nH=nH, span=span)

    jax.block_until_ready((loss, logits, logits_only))
    assert logits.shape == (B, n_labels) and logits_only.shape == (B, n_labels)
    assert loss.shape == ()
    assert bool(jnp.isfinite(loss)) and bool(jnp.all(jnp.isfinite(logits)))
    print("KERNEL_OK")
</pallas_src>

<mosaic_0001>
module attributes {stable_mosaic.version = 11 : i64} {
  func.func @_emb_ln_kernel(%arg0: i32, %arg1: memref<16x64xf32, #tpu.memory_space<vmem>>, %arg2: memref<16x1xf32, #tpu.memory_space<vmem>>, %arg3: memref<1x64xf32, #tpu.memory_space<vmem>>, %arg4: memref<1x64xf32, #tpu.memory_space<vmem>>, %arg5: memref<16x64xf32, #tpu.memory_space<vmem>>) attributes {dimension_semantics = [#tpu.dimension_semantics<parallel>], iteration_bounds = array<i64: 1>, scalar_prefetch = 0 : i64, scratch_operands = 0 : i64, tpu.core_type = #tpu.core_type<tc>, window_params = [{transform_indices = @transform_0, window_bounds = array<i64: 16, 64>}, {transform_indices = @transform_1, window_bounds = array<i64: 16, 1>}, {pipeline_mode = #tpu.pipeline_mode<synchronous>, transform_indices = @transform_2, window_bounds = array<i64: 1, 64>}, {pipeline_mode = #tpu.pipeline_mode<synchronous>, transform_indices = @transform_3, window_bounds = array<i64: 1, 64>}, {transform_indices = @transform_4, window_bounds = array<i64: 16, 64>}]} {
    %c0 = arith.constant 0 : index
    %c0_0 = arith.constant 0 : index
    %0 = vector.load %arg1[%c0, %c0_0] : memref<16x64xf32, #tpu.memory_space<vmem>>, vector<16x64xf32>
    %c0_1 = arith.constant 0 : index
    %c0_2 = arith.constant 0 : index
    %1 = vector.load %arg3[%c0_1, %c0_2] : memref<1x64xf32, #tpu.memory_space<vmem>>, vector<1x64xf32>
    %c0_3 = arith.constant 0 : index
    %c0_4 = arith.constant 0 : index
    %2 = vector.load %arg4[%c0_3, %c0_4] : memref<1x64xf32, #tpu.memory_space<vmem>>, vector<1x64xf32>
    %cst = arith.constant dense<0.000000e+00> : vector<16xf32>
    %3 = vector.multi_reduction <add>, %0, %cst [1] : vector<16x64xf32> to vector<16xf32>
    %4 = vector.shape_cast %3 : vector<16xf32> to vector<16x1xf32>
    %cst_5 = arith.constant 6.400000e+01 : f32
    %5 = vector.broadcast %cst_5 : f32 to vector<16x1xf32>
    %6 = arith.divf %4, %5 : vector<16x1xf32>
    %7 = vector.broadcast %6 : vector<16x1xf32> to vector<16x64xf32>
    %8 = arith.subf %0, %7 : vector<16x64xf32>
    %9 = arith.mulf %8, %8 : vector<16x64xf32>
    %cst_6 = arith.constant dense<0.000000e+00> : vector<16xf32>
    %10 = vector.multi_reduction <add>, %9, %cst_6 [1] : vector<16x64xf32> to vector<16xf32>
    %11 = vector.shape_cast %10 : vector<16xf32> to vector<16x1xf32>
    %cst_7 = arith.constant 6.400000e+01 : f32
    %12 = vector.broadcast %cst_7 : f32 to vector<16x1xf32>
    %13 = arith.divf %11, %12 : vector<16x1xf32>
    %14 = vector.broadcast %6 : vector<16x1xf32> to vector<16x64xf32>
    %15 = arith.subf %0, %14 : vector<16x64xf32>
    %cst_8 = arith.constant 1.000000e-07 : f32
    %16 = vector.broadcast %cst_8 : f32 to vector<16x1xf32>
    %17 = arith.addf %13, %16 : vector<16x1xf32>
    %18 = math.rsqrt %17 : vector<16x1xf32>
    %19 = vector.broadcast %18 : vector<16x1xf32> to vector<16x64xf32>
    %20 = arith.mulf %15, %19 : vector<16x64xf32>
    %21 = vector.broadcast %1 : vector<1x64xf32> to vector<16x64xf32>
    %22 = arith.mulf %20, %21 : vector<16x64xf32>
    %23 = vector.broadcast %2 : vector<1x64xf32> to vector<16x64xf32>
    %24 = arith.addf %22, %23 : vector<16x64xf32>
    %c0_9 = arith.constant 0 : index
    %c0_10 = arith.constant 0 : index
    %25 = vector.load %arg2[%c0_9, %c0_10] : memref<16x1xf32, #tpu.memory_space<vmem>>, vector<16x1xf32>
    %26 = vector.broadcast %25 : vector<16x1xf32> to vector<16x64xf32>
    %27 = arith.mulf %24, %26 : vector<16x64xf32>
    %c0_11 = arith.constant 0 : index
    %c0_12 = arith.constant 0 : index
    %28 = vector.load %arg5[%c0_11, %c0_12] : memref<16x64xf32, #tpu.memory_space<vmem>>, vector<16x64xf32>
    tpu.vector_store %arg5[%c0_11, %c0_12], %27 {strides = array<i32>} : memref<16x64xf32, #tpu.memory_space<vmem>>, vector<16x64xf32>,
    return
  }
  func.func @transform_0(%arg0: i32) -> (i32, i32) {
    %c0_i32 = arith.constant 0 : i32
    %c0_i32_0 = arith.constant 0 : i32
    return %arg0, %c0_i32 : i32, i32
  }
  func.func @transform_1(%arg0: i32) -> (i32, i32) {
    %c0_i32 = arith.constant 0 : i32
    %c0_i32_0 = arith.constant 0 : i32
    return %arg0, %c0_i32 : i32, i32
  }
  func.func @transform_2(%arg0: i32) -> (i32, i32) {
    %c0_i32 = arith.constant 0 : i32
    %c0_i32_0 = arith.constant 0 : i32
    %c0_i32_1 = arith.constant 0 : i32
    return %c0_i32, %c0_i32_0 : i32, i32
  }
  func.func @transform_3(%arg0: i32) -> (i32, i32) {
    %c0_i32 = arith.constant 0 : i32
    %c0_i32_0 = arith.constant 0 : i32
    %c0_i32_1 = arith.constant 0 : i32
    return %c0_i32, %c0_i32_0 : i32, i32
  }
  func.func @transform_4(%arg0: i32) -> (i32, i32) {
    %c0_i32 = arith.constant 0 : i32
    %c0_i32_0 = arith.constant 0 : i32
    return %arg0, %c0_i32 : i32, i32
  }
}

</mosaic_0001>

<bundles_post_ra>
// kernel: tpu_custom_call.1
= control target key start
LH: loop header
LB: loop body
LE: loop exit
PB: predicated region body
PF: predicated region fallthrough
CT: control target
= control target key end

     0   :  { %vm22_vm0 = vcmask 523264   ;;  %s216_s0 = inlined_call_operand.vmem [shape: f32[16,64], index: 0, kind: input, shape index: {}]   ;;  %s217_s1 = inlined_call_operand.vmem [shape: f32[16,1], index: 1, kind: input, shape index: {}]   ;;  %s218_s2 = inlined_call_operand.vmem [shape: f32[1,64], index: 2, kind: input, shape index: {}]   ;;  %s219_s3 = inlined_call_operand.vmem [shape: f32[1,64], index: 3, kind: input, shape index: {}]   ;;  %s220_s4 = inlined_call_operand.hbm [shape: f32[16,64], index: 4, kind: output, shape index: {}]  }
   0x1   :  { %v18_v0 = vld [vmem:[%s216_s0] sm:$0xff] }
   0x2   :  { %v23_v1 = vsel %vm22_vm0, %v18_v0, 0.0 }
   0x3   :  { %9 = vsyncpa [#allocation3], 0  ;;  %24 = vadd.xlane.f32.xlu0 %v23_v1  ;;  %v19_v2 = vld [vmem:[%s216_s0 + $0x8] sm:$0xff]  ;;  %v159_v4 = vmov 64.0   ;;  %v84_v7 = vld [vmem:[%s217_s1] sm:$0xff]  ;;  %v160_v8 = vmov 0  }
   0x4   :  { %v26_v3 = vsel %vm22_vm0, %v19_v2, 0.0  ;;  %127 = vrcp.f32 %v159_v4  ;;  %123 = vset.pattern.permute.xlu2 %v160_v8  ;;  %124 = vset.pattern.permute.xlu0 %v160_v8  ;;  %v85_v11 = vld [vmem:[%s217_s1 + $0x8] sm:$0xff]  ;;  %v125_v38 = vld [vmem:[%s218_s2] ss:$0 sm:$0xff]  ;;  %s161_s2 = smov [#allocation2]   ;;  %s162_s28 = smov 128  }
   0x5   :  { %88 = vperm.xlu2 %123, %v84_v7   ;;  %v126_v42 = vld [vmem:[%s219_s3] ss:$0 sm:$0xff]  ;;  %s104_s25 = sshll.u32 %s161_s2, 4  ;;  %s106_s3 = sshll.u32 %s220_s4, 4  ;;  %s105_s25 = int_to_ptr.vmem [resolvable:$true] %s104_s25  ;;  %s107_s3 = int_to_ptr.hbm [resolvable:$true] %s106_s3 }
   0x6   :  { %s163_s29 = smov 8  }
   0xa   :  { %v128_v5 = vpop.eup %127 }
   0xb   :  { %27 = vadd.xlane.f32.xlu0 %v26_v3  ;;  %v30_v6 = vmul.f32 64.0, %v128_v5  ;;  %vm34_vm1 = vweird.f32 %v128_v5 }
   0xd   :  { %v31_v9 = vsub.f32 1.0, %v30_v6  ;;  %93 = vperm.xlu2 %123, %v85_v11  }
   0xf   :  { %v32_v10 = vmul.f32 %v128_v5, %v31_v9 }
  0x11   :  { %v33_v12 = vadd.f32 %v128_v5, %v32_v10 }
  0x13   :  { %v35_v13 = vsel %vm34_vm1, %v128_v5, %v33_v12 }
  0x5f   :  { %v89_v46 = vpop.permute.xlu2 %88 }
  0x67   :  { %v94_v54 = vpop.permute.xlu2 %93 }
  0x76   :  { %v25_v14 = vpop.xlane.xlu0 %24 }
  0x77   :  { %v36_v15 = vmul.f32 %v35_v13, %v25_v14 }
  0x79   :  { %v38_v16 = vsub.f32 %v18_v0, %v36_v15 }
  0x7b   :  { %v40_v17 = vmul.f32 %v38_v16, %v38_v16 }
  0x7d   :  { %v42_v18 = vsel %vm22_vm0, %v40_v17, 0.0 }
  0x7e   :  { %43 = vadd.xlane.f32.xlu1 %v42_v18  ;;  %v28_v19 = vpop.xlane.xlu0 %27 }
  0x7f   :  { %v37_v20 = vmul.f32 %v35_v13, %v28_v19 }
  0x81   :  { %v39_v21 = vsub.f32 %v19_v2, %v37_v20 }
  0x83   :  { %v41_v22 = vmul.f32 %v39_v21, %v39_v21 }
  0x85   :  { %v45_v23 = vsel %vm22_vm0, %v41_v22, 0.0 }
  0x86   :  { %46 = vadd.xlane.f32.xlu1 %v45_v23 }
  0xf1   :  { %v44_v24 = vpop.xlane.xlu1 %43 }
  0xf2   :  { %v48_v25 = vmul.f32 %v44_v24, %v35_v13 }
  0xf4   :  { %v50_v26 = vadd.f32 1e-07, %v48_v25 }
  0xf6   :  { %129 = vrsqrt.f32 %v50_v26  ;;  %vm58_vm3 = vweird.f32 %v50_v26 }
  0xf9   :  { %v47_v27 = vpop.xlane.xlu1 %46 }
  0xfa   :  { %v49_v28 = vmul.f32 %v47_v27, %v35_v13 }
  0xfc   :  { %v130_v29 = vpop.eup %129  ;;  %v51_v30 = vadd.f32 1e-07, %v49_v28 }
  0xfd   :  { %v53_v31 = vmul.f32 %v130_v29, %v50_v26  ;;  %vm59_vm2 = vweird.f32 %v130_v29 }
  0xfe   :  { %131 = vrsqrt.f32 %v51_v30  ;;  %vm60_vm4 = vmor %vm58_vm3, %vm59_vm2  ;;  %vm68_vm6 = vweird.f32 %v51_v30 }
  0xff   :  { %v54_v32 = vmul.f32 %v130_v29, %v53_v31 }
 0x101   :  { %v55_v33 = vmul.f32 0.5, %v54_v32 }
 0x103   :  { %v56_v34 = vsub.f32 1.5, %v55_v33 }
 0x104   :  { %v132_v35 = vpop.eup %131 }
 0x105   :  { %v57_v36 = vmul.f32 %v130_v29, %v56_v34  ;;  %v63_v37 = vmul.f32 %v132_v35, %v51_v30  ;;  %vm69_vm5 = vweird.f32 %v132_v35 }
 0x106   :  { %vm70_vm7 = vmor %vm68_vm6, %vm69_vm5 }
 0x107   :  { %v64_v39 = vmul.f32 %v132_v35, %v63_v37  ;;  %v61_v40 = vsel %vm60_vm4, %v130_v29, %v57_v36 }
 0x108   :  { %v72_v41 = vmul.f32 %v61_v40, %v38_v16 }
 0x109   :  { %v65_v43 = vmul.f32 0.5, %v64_v39 }
 0x10a   :  { %v77_v44 = vmul.f32 %v125_v38, %v72_v41 }
 0x10b   :  { %v66_v45 = vsub.f32 1.5, %v65_v43 }
 0x10c   :  { %v82_v47 = vadd.f32 %v126_v42, %v77_v44 }
 0x10d   :  { %v67_v48 = vmul.f32 %v132_v35, %v66_v45 }
 0x10e   :  { %v96_v49 = vmul.f32 %v89_v46, %v82_v47 }
 0x10f   :  { %v71_v50 = vsel %vm70_vm7, %v132_v35, %v67_v48 }
 0x110   :  { %98 = vst.msk [vmem:[#allocation2] sm:$0xff] %vm22_vm0, %v96_v49  ;;  %v73_v51 = vmul.f32 %v71_v50, %v39_v21 }
 0x112   :  { %v78_v52 = vmul.f32 %v125_v38, %v73_v51 }
 0x114   :  { %v83_v53 = vadd.f32 %v126_v42, %v78_v52 }
 0x116   :  { %v97_v55 = vmul.f32 %v94_v54, %v83_v53 }
 0x118   :  { %99 = vst.msk [vmem:[#allocation2 + $0x8] sm:$0xff] %vm22_vm0, %v97_v55 }
 0x119   :  { %112 = dma.vmem_to_hbm [thread:$0]  %s105_s25, 256, %s107_s3, [#allocation3], %s162_s28, %s162_s28, %s163_s29  }
 0x11a   :  { %157 = dma.done.wait [#allocation3], 256  }
 0x11b   :  { %158 = vsyncadd [#allocation3], 4294967040 }
 0x11c   :  { %117 = vsyncpa [#allocation3], 1 }

</bundles_post_ra>
